<compile_context>
chip_gen: v7x
topology: tpu7x:2x2x1
jax: 0.10.0
libtpu: 0.0.40
codegen_flags: <defaults>
</compile_context>

<pallas_src>
import jax
import jax.numpy as jnp
from jax.experimental import pallas as pl
from jax.experimental.pallas import tpu as pltpu


def _round_up(x, m):
    return ((x + m - 1) // m) * m


def _pad_to(x, axis, target):
    pad = target - x.shape[axis]
    if pad <= 0:
        return x
    widths = [(0, 0)] * x.ndim
    widths[axis] = (0, pad)
    return jnp.pad(x, widths)


def _vmem_budget_bytes():
    """~75% of per-core VMEM; conservative 64 MiB (v7x) fallback."""
    cap = 64 * 1024 * 1024
    try:
        info = pltpu.get_tpu_info()
        cap = int(getattr(info, "vmem_capacity_bytes", cap)) or cap
    except Exception:
        pass
    return (cap * 3) // 4


# ---------------------------------------------------------------------------
# Kernels
# ---------------------------------------------------------------------------
def _ffn_kernel_resident(x_ref, w1_ref, b1_ref, w2_ref, b2_ref, o_ref):
    """Weights fully resident in VMEM; grid = (M tiles,)."""
    x = x_ref[...]                                            # (tm, Cin_p) bf16
    h = jnp.dot(x, w1_ref[...], preferred_element_type=jnp.float32)
    h = jnp.maximum(h + b1_ref[...], 0.0)
    y = jnp.dot(h.astype(w2_ref.dtype), w2_ref[...],
                preferred_element_type=jnp.float32)
    o_ref[...] = (y + b2_ref[...] + x.astype(jnp.float32)).astype(o_ref.dtype)


def _ffn_kernel_streamed_accout(x_ref, w1_ref, b1_ref, w2_ref, b2_ref, o_ref):
    """Chid streamed on grid axis 1; f32 output block used as the accumulator."""
    k = pl.program_id(1)
    x = x_ref[...]                                            # (tm, Cin_p) bf16

    @pl.when(k == 0)
    def _init():
        # Fold residual + b2 into the accumulator init (no zero-fill pass).
        o_ref[...] = x.astype(jnp.float32) + b2_ref[...]

    h = jnp.dot(x, w1_ref[...], preferred_element_type=jnp.float32)
    h = jnp.maximum(h + b1_ref[...], 0.0)
    o_ref[...] += jnp.dot(h.astype(w2_ref.dtype), w2_ref[...],
                          preferred_element_type=jnp.float32)


def _ffn_kernel_streamed_scratch(x_ref, w1_ref, b1_ref, w2_ref, b2_ref,
                                 o_ref, acc_ref):
    """Chid streamed; f32 VMEM scratch accumulator (non-f32 output dtype)."""
    k = pl.program_id(1)
    x = x_ref[...]

    @pl.when(k == 0)
    def _init():
        acc_ref[...] = x.astype(jnp.float32) + b2_ref[...]

    h = jnp.dot(x, w1_ref[...], preferred_element_type=jnp.float32)
    h = jnp.maximum(h + b1_ref[...], 0.0)
    acc_ref[...] += jnp.dot(h.astype(w2_ref.dtype), w2_ref[...],
                            preferred_element_type=jnp.float32)

    @pl.when(k == pl.num_programs(1) - 1)
    def _finalize():
        o_ref[...] = acc_ref[...].astype(o_ref.dtype)


# ---------------------------------------------------------------------------
# Wrapper
# ---------------------------------------------------------------------------
def ffn_pallas(x2d, w1, b1, w2, b2, *, out_dtype=None, tk=512):
    """x2d: (M, Cin); w1: (Cin, Chid); b1: (1, Chid); w2: (Chid, Cout); b2: (1, Cout).

    Cout must equal Cin (residual). Returns (M, Cout) in out_dtype
    (default: x2d.dtype; callers may request bf16 for memory-bound stages).
    """
    M, cin = x2d.shape
    chid = w1.shape[1]
    cout = w2.shape[1]
    assert cout == cin, "residual requires out_features == in_features"
    out_dtype = jnp.dtype(out_dtype or x2d.dtype)
    itemsize_out = out_dtype.itemsize

    # ---- lane-dense channel padding (multiples of 128) ----
    cin_p = _round_up(cin, 128)
    cout_p = cin_p
    chid_p = _round_up(chid, 128)

    budget = _vmem_budget_bytes()
    vmem_limit = int(min(max(budget, 32 * 1024 * 1024), 128 * 1024 * 1024))

    # ---- M-tile selection (multiple of 8; >=2 tiles when M allows, so the
    #      parallel M axis can shard across v7x's two TensorCores) ----
    m8 = _round_up(max(M, 1), 8)
    tm_cap = m8 if M <= 8 else min(m8, _round_up((M + 1) // 2, 8))
    tm_max = 2048 if budget >= 96 * 1024 * 1024 else 1024
    candidates = (tm_max, 1024, 512, 256, 128, 64, 32, 16, 8)

    def resident_footprint(t):
        return ((cin_p * chid_p + chid_p * cout_p) * 2 * 2   # W1+W2 bf16 (x2 buffers)
                + (chid_p + cout_p) * 4 * 2                  # biases f32
                + 2 * t * cin_p * 2                          # x tile bf16 (dbl-buf)
                + 2 * t * cout_p * itemsize_out              # out tile
                + t * chid_p * 6)                            # f32 'h' + bf16 copy

    def streamed_footprint(t, tk_):
        return (2 * t * cin_p * 2                            # x tile bf16
                + 2 * cin_p * tk_ * 2                        # W1 chunk bf16
                + 2 * tk_ * cout_p * 2                       # W2 chunk bf16
                + 2 * tk_ * 4 + 2 * cout_p * 4               # bias chunks f32
                + 2 * t * cout_p * itemsize_out              # out tile
                + (0 if out_dtype == jnp.float32 else t * cout_p * 4)  # acc scratch
                + t * tk_ * 6)                               # f32 'h' + bf16 copy

    tm_res = None
    for cand in candidates:
        t = min(cand, tm_cap)
        if resident_footprint(t) <= budget:
            tm_res = t
            break

    use_resident = tm_res is not None and tm_res >= min(128, tm_cap)

    if use_resident:
        # ---------------- resident-weights fast path ----------------
        tm = tm_res
        m_p = _round_up(M, tm)

        x_p = _pad_to(_pad_to(x2d, 1, cin_p), 0, m_p).astype(jnp.bfloat16)
        w1_p = _pad_to(_pad_to(w1, 0, cin_p), 1, chid_p).astype(jnp.bfloat16)
        b1_p = _pad_to(b1, 1, chid_p).astype(jnp.float32)
        w2_p = _pad_to(_pad_to(w2, 0, chid_p), 1, cout_p).astype(jnp.bfloat16)
        b2_p = _pad_to(b2, 1, cout_p).astype(jnp.float32)

        cost = pl.CostEstimate(
            flops=2 * m_p * (cin_p * chid_p + chid_p * cout_p),
            transcendentals=0,
            bytes_accessed=(x_p.size * 2 + w1_p.size * 2 + w2_p.size * 2
                            + b1_p.size * 4 + b2_p.size * 4
                            + m_p * cout_p * itemsize_out),
        )

        out_p = pl.pallas_call(
            _ffn_kernel_resident,
            out_shape=jax.ShapeDtypeStruct((m_p, cout_p), out_dtype),
            grid_spec=pltpu.PrefetchScalarGridSpec(
                num_scalar_prefetch=0,
                grid=(m_p // tm,),
                in_specs=[
                    pl.BlockSpec((tm, cin_p), lambda i: (i, 0)),      # x tile
                    pl.BlockSpec((cin_p, chid_p), lambda i: (0, 0)),  # W1 (resident)
                    pl.BlockSpec((1, chid_p), lambda i: (0, 0)),      # b1
                    pl.BlockSpec((chid_p, cout_p), lambda i: (0, 0)), # W2 (resident)
                    pl.BlockSpec((1, cout_p), lambda i: (0, 0)),      # b2
                ],
                out_specs=pl.BlockSpec((tm, cout_p), lambda i: (i, 0)),
            ),
            compiler_params=pltpu.CompilerParams(
                dimension_semantics=("parallel",),
                vmem_limit_bytes=vmem_limit,
            ),
            cost_estimate=cost,
        )(x_p, w1_p, b1_p, w2_p, b2_p)
        return out_p[:M, :cout]

    # ---------------- k-streamed fallback (very large Chid) ----------------
    tk_eff = max(128, (min(tk, chid_p) // 128) * 128)
    chid_pp = _round_up(chid_p, tk_eff)

    tm = 8
    for cand in candidates:
        t = min(cand, tm_cap)
        if streamed_footprint(t, tk_eff) <= budget:
            tm = t
            break
    m_p = _round_up(M, tm)
    n_m_tiles = m_p // tm

    x_p = _pad_to(_pad_to(x2d, 1, cin_p), 0, m_p).astype(jnp.bfloat16)
    w1_p = _pad_to(_pad_to(w1, 0, cin_p), 1, chid_pp).astype(jnp.bfloat16)
    b1_p = _pad_to(b1, 1, chid_pp).astype(jnp.float32)
    w2_p = _pad_to(_pad_to(w2, 0, chid_pp), 1, cout_p).astype(jnp.bfloat16)
    b2_p = _pad_to(b2, 1, cout_p).astype(jnp.float32)

    # Weights are re-fetched once per M tile in this configuration.
    cost = pl.CostEstimate(
        flops=2 * m_p * (cin_p * chid_pp + chid_pp * cout_p),
        transcendentals=0,
        bytes_accessed=(x_p.size * 2
                        + n_m_tiles * (w1_p.size * 2 + w2_p.size * 2)
                        + b1_p.size * 4 + b2_p.size * 4
                        + m_p * cout_p * itemsize_out),
    )

    grid = (n_m_tiles, chid_pp // tk_eff)
    in_specs = [
        pl.BlockSpec((tm, cin_p), lambda i, k: (i, 0)),       # x tile
        pl.BlockSpec((cin_p, tk_eff), lambda i, k: (0, k)),   # W1 chunk
        pl.BlockSpec((1, tk_eff), lambda i, k: (0, k)),       # b1 chunk
        pl.BlockSpec((tk_eff, cout_p), lambda i, k: (k, 0)),  # W2 chunk
        pl.BlockSpec((1, cout_p), lambda i, k: (0, 0)),       # b2
    ]
    out_spec = pl.BlockSpec((tm, cout_p), lambda i, k: (i, 0))

    if out_dtype == jnp.float32:
        kernel = _ffn_kernel_streamed_accout
        scratch = []
    else:
        kernel = _ffn_kernel_streamed_scratch
        scratch = [pltpu.VMEM((tm, cout_p), jnp.float32)]

    out_p = pl.pallas_call(
        kernel,
        out_shape=jax.ShapeDtypeStruct((m_p, cout_p), out_dtype),
        grid_spec=pltpu.PrefetchScalarGridSpec(
            num_scalar_prefetch=0,
            grid=grid,
            in_specs=in_specs,
            out_specs=out_spec,
            scratch_shapes=scratch,
        ),
        compiler_params=pltpu.CompilerParams(
            dimension_semantics=("parallel", "arbitrary"),
            vmem_limit_bytes=vmem_limit,
        ),
        cost_estimate=cost,
    )(x_p, w1_p, b1_p, w2_p, b2_p)
    return out_p[:M, :cout]


# ---------------------------------------------------------------------------
# BN folding, module wrapper, reference, test
# ---------------------------------------------------------------------------
def fold_bn(conv_w, conv_b, gamma, beta, mean, var, eps=1e-5):
    """Fold eval-mode BatchNorm2d into a 1x1 conv expressed as (Cin, Cout) matmul.

    conv_w: (Cout, Cin) torch-style 1x1 conv weight (kernel dims squeezed)
    Returns (W: (Cin, Cout), b: (1, Cout)) in f32 for y = x @ W + b.
    """
    scale = gamma / jnp.sqrt(var + eps)                      # (Cout,)
    w_eff = conv_w * scale[:, None]                          # (Cout, Cin)
    b_eff = (conv_b - mean) * scale + beta                   # (Cout,)
    return w_eff.T.astype(jnp.float32), b_eff[None, :].astype(jnp.float32)


@jax.jit
def ffn_forward(x_nchw, params):
    """x_nchw: (N, C, H, W) -> (N, C, H, W), matching FFN.forward(x, h0)."""
    N, C, H, W = x_nchw.shape
    w1, b1 = fold_bn(params["fc1_w"], params["fc1_b"], params["bn1_g"],
                     params["bn1_b"], params["bn1_m"], params["bn1_v"])
    w2, b2 = fold_bn(params["fc2_w"], params["fc2_b"], params["bn2_g"],
                     params["bn2_b"], params["bn2_m"], params["bn2_v"])
    # NCHW -> NHWC -> (M, C)
    x2d = jnp.transpose(x_nchw, (0, 2, 3, 1)).reshape(N * H * W, C)
    y2d = ffn_pallas(x2d, w1, b1, w2, b2)
    # (M, C) -> NHWC -> NCHW
    return jnp.transpose(y2d.reshape(N, H, W, C), (0, 3, 1, 2))


def make_params(key, in_features, hidden_features):
    ks = jax.random.split(key, 4)
    cin, chid, cout = in_features, hidden_features, in_features
    return {
        # Conv2d(Cin, Chid, 1) weight (Chid, Cin, 1, 1) squeezed to (Chid, Cin)
        "fc1_w": jax.random.normal(ks[0], (chid, cin), jnp.float32) * 0.1,
        "fc1_b": jax.random.normal(ks[1], (chid,), jnp.float32) * 0.1,
        "bn1_g": jnp.ones((chid,), jnp.float32) * 1.1,
        "bn1_b": jnp.full((chid,), 0.05, jnp.float32),
        "bn1_m": jnp.full((chid,), 0.02, jnp.float32),
        "bn1_v": jnp.ones((chid,), jnp.float32) * 0.9,
        # Conv2d(Chid, Cout, 1)
        "fc2_w": jax.random.normal(ks[2], (cout, chid), jnp.float32) * 0.1,
        "fc2_b": jax.random.normal(ks[3], (cout,), jnp.float32) * 0.1,
        "bn2_g": jnp.ones((cout,), jnp.float32) * 0.95,
        "bn2_b": jnp.full((cout,), -0.03, jnp.float32),
        "bn2_m": jnp.full((cout,), 0.01, jnp.float32),
        "bn2_v": jnp.ones((cout,), jnp.float32) * 1.05,
    }


def ffn_reference(x_nchw, params):
    """Plain-JAX f32 reference of the same folded computation."""
    N, C, H, W = x_nchw.shape
    w1, b1 = fold_bn(params["fc1_w"], params["fc1_b"], params["bn1_g"],
                     params["bn1_b"], params["bn1_m"], params["bn1_v"])
    w2, b2 = fold_bn(params["fc2_w"], params["fc2_b"], params["bn2_g"],
                     params["bn2_b"], params["bn2_m"], params["bn2_v"])
    x2d = jnp.transpose(x_nchw, (0, 2, 3, 1)).reshape(N * H * W, C)
    h = jnp.maximum(x2d @ w1 + b1, 0.0)
    y2d = h @ w2 + b2 + x2d
    return jnp.transpose(y2d.reshape(N, H, W, C), (0, 3, 1, 2))


if __name__ == "__main__":
    key = jax.random.PRNGKey(0)
    k_x, k_p = jax.random.split(key)

    N, C, H, W = 2, 4, 16, 16          # in_features = 4
    hidden = 32                        # hidden_features = 32
    x = jax.random.normal(k_x, (N, C, H, W), jnp.float32)
    params = make_params(k_p, C, hidden)

    out = ffn_forward(x, params)
    out = jax.block_until_ready(out)

    ref = ffn_reference(x, params)
    assert out.shape == (N, C, H, W)
    # bf16 matmul operands + bf16-streamed residual => ~1e-2 level error vs f32 ref
    assert jnp.allclose(out, ref, atol=5e-2, rtol=5e-2), "mismatch vs reference"

    print("KERNEL_OK")
</pallas_src>

<mosaic_0001>
module attributes {stable_mosaic.version = 11 : i64} {
  func.func @_ffn_kernel_resident(%arg0: i32, %arg1: memref<256x128xbf16, #tpu.memory_space<vmem>>, %arg2: memref<128x128xbf16, #tpu.memory_space<vmem>>, %arg3: memref<1x128xf32, #tpu.memory_space<vmem>>, %arg4: memref<128x128xbf16, #tpu.memory_space<vmem>>, %arg5: memref<1x128xf32, #tpu.memory_space<vmem>>, %arg6: memref<256x128xf32, #tpu.memory_space<vmem>>) attributes {dimension_semantics = [#tpu.dimension_semantics<parallel>], iteration_bounds = array<i64: 2>, scalar_prefetch = 0 : i64, scratch_operands = 0 : i64, tpu.core_type = #tpu.core_type<tc>, window_params = [{transform_indices = @transform_0, window_bounds = array<i64: 256, 128>}, {pipeline_mode = #tpu.pipeline_mode<synchronous>, transform_indices = @transform_1, window_bounds = array<i64: 128, 128>}, {pipeline_mode = #tpu.pipeline_mode<synchronous>, transform_indices = @transform_2, window_bounds = array<i64: 1, 128>}, {pipeline_mode = #tpu.pipeline_mode<synchronous>, transform_indices = @transform_3, window_bounds = array<i64: 128, 128>}, {pipeline_mode = #tpu.pipeline_mode<synchronous>, transform_indices = @transform_4, window_bounds = array<i64: 1, 128>}, {transform_indices = @transform_5, window_bounds = array<i64: 256, 128>}]} {
    %c0 = arith.constant 0 : index
    %c0_0 = arith.constant 0 : index
    %0 = vector.load %arg1[%c0, %c0_0] : memref<256x128xbf16, #tpu.memory_space<vmem>>, vector<256x128xbf16>
    %c0_1 = arith.constant 0 : index
    %c0_2 = arith.constant 0 : index
    %1 = vector.load %arg2[%c0_1, %c0_2] : memref<128x128xbf16, #tpu.memory_space<vmem>>, vector<128x128xbf16>
    %cst = arith.constant dense<0.000000e+00> : vector<256x128xf32>
    %2 = tpu.matmul %0, %1, %cst {dimension_numbers = #tpu.dot_dimension_numbers<[1], [0], [0], [1], [0, 0, 1, 1], [], []>} : vector<256x128xbf16>, vector<128x128xbf16>, vector<256x128xf32> -> vector<256x128xf32>
    %c0_3 = arith.constant 0 : index
    %c0_4 = arith.constant 0 : index
    %3 = vector.load %arg3[%c0_3, %c0_4] : memref<1x128xf32, #tpu.memory_space<vmem>>, vector<1x128xf32>
    %4 = vector.broadcast %3 : vector<1x128xf32> to vector<256x128xf32>
    %5 = arith.addf %2, %4 : vector<256x128xf32>
    %cst_5 = arith.constant 0.000000e+00 : f32
    %6 = vector.broadcast %cst_5 : f32 to vector<256x128xf32>
    %7 = arith.maximumf %5, %6 : vector<256x128xf32>
    %8 = arith.truncf %7 : vector<256x128xf32> to vector<256x128xbf16>
    %c0_6 = arith.constant 0 : index
    %c0_7 = arith.constant 0 : index
    %9 = vector.load %arg4[%c0_6, %c0_7] : memref<128x128xbf16, #tpu.memory_space<vmem>>, vector<128x128xbf16>
    %cst_8 = arith.constant dense<0.000000e+00> : vector<256x128xf32>
    %10 = tpu.matmul %8, %9, %cst_8 {dimension_numbers = #tpu.dot_dimension_numbers<[1], [0], [0], [1], [0, 0, 1, 1], [], []>} : vector<256x128xbf16>, vector<128x128xbf16>, vector<256x128xf32> -> vector<256x128xf32>
    %c0_9 = arith.constant 0 : index
    %c0_10 = arith.constant 0 : index
    %11 = vector.load %arg5[%c0_9, %c0_10] : memref<1x128xf32, #tpu.memory_space<vmem>>, vector<1x128xf32>
    %12 = vector.broadcast %11 : vector<1x128xf32> to vector<256x128xf32>
    %13 = arith.addf %10, %12 : vector<256x128xf32>
    %14 = arith.extf %0 : vector<256x128xbf16> to vector<256x128xf32>
    %15 = arith.addf %13, %14 : vector<256x128xf32>
    %c0_11 = arith.constant 0 : index
    %c0_12 = arith.constant 0 : index
    %16 = vector.load %arg6[%c0_11, %c0_12] : memref<256x128xf32, #tpu.memory_space<vmem>>, vector<256x128xf32>
    tpu.vector_store %arg6[%c0_11, %c0_12], %15 {strides = array<i32>} : memref<256x128xf32, #tpu.memory_space<vmem>>, vector<256x128xf32>,
    return
  }
  func.func @transform_0(%arg0: i32) -> (i32, i32) {
    %c0_i32 = arith.constant 0 : i32
    %c0_i32_0 = arith.constant 0 : i32
    return %arg0, %c0_i32 : i32, i32
  }
  func.func @transform_1(%arg0: i32) -> (i32, i32) {
    %c0_i32 = arith.constant 0 : i32
    %c0_i32_0 = arith.constant 0 : i32
    %c0_i32_1 = arith.constant 0 : i32
    return %c0_i32, %c0_i32_0 : i32, i32
  }
  func.func @transform_2(%arg0: i32) -> (i32, i32) {
    %c0_i32 = arith.constant 0 : i32
    %c0_i32_0 = arith.constant 0 : i32
    %c0_i32_1 = arith.constant 0 : i32
    return %c0_i32, %c0_i32_0 : i32, i32
  }
  func.func @transform_3(%arg0: i32) -> (i32, i32) {
    %c0_i32 = arith.constant 0 : i32
    %c0_i32_0 = arith.constant 0 : i32
    %c0_i32_1 = arith.constant 0 : i32
    return %c0_i32, %c0_i32_0 : i32, i32
  }
  func.func @transform_4(%arg0: i32) -> (i32, i32) {
    %c0_i32 = arith.constant 0 : i32
    %c0_i32_0 = arith.constant 0 : i32
    %c0_i32_1 = arith.constant 0 : i32
    return %c0_i32, %c0_i32_0 : i32, i32
  }
  func.func @transform_5(%arg0: i32) -> (i32, i32) {
    %c0_i32 = arith.constant 0 : i32
    %c0_i32_0 = arith.constant 0 : i32
    return %arg0, %c0_i32 : i32, i32
  }
}

</mosaic_0001>

<bundles_post_ra>
// kernel: ffn_forward.1
= control target key start
LH: loop header
LB: loop body
LE: loop exit
PB: predicated region body
PF: predicated region fallthrough
CT: control target
= control target key end

     0   :  { %s1304_s18 = smov 0   ;;  %s1579_s0 = inlined_call_operand.vmem [shape: bf16[512,128], index: 0, kind: input, shape index: {}]   ;;  %s1580_s1 = inlined_call_operand.vmem [shape: bf16[128,128], index: 1, kind: input, shape index: {}]   ;;  %s1581_s2 = inlined_call_operand.vmem [shape: f32[1,128], index: 2, kind: input, shape index: {}]   ;;  %s1582_s3 = inlined_call_operand.vmem [shape: bf16[128,128], index: 3, kind: input, shape index: {}]   ;;  %s1583_s4 = inlined_call_operand.vmem [shape: f32[1,128], index: 4, kind: input, shape index: {}]   ;;  %s1584_s5 = inlined_call_operand.vmem [shape: f32[512,128], index: 5, kind: output, shape index: {}]  }
   0x1 LB: > { %s1021_s19 = sadd.s32 4294967295, %s1272_s18   ;;  %p1025_p0 = scmp.ge.s32.totalorder %s1272_s18, 1  ;;  %s1272_s18 = sphi %s1304_s18, %s15_s18  }
   0x2   : > { %p188_p1 = scmp.lt.s32.totalorder %s1272_s18, 3 }
   0x4   : > { %p189_p2 = pnand %p1025_p0, %p188_p1 }
   0x5   : > { %v1218_v0 = vld [vmem:[%s1580_s1] sm:$0xff] (!%p189_p2)   ;;  %s1026_s22 = sshll.u32 (!%p189_p2), %s1021_s19, 5  ;;  %v1219_v1 = vld [vmem:[%s1580_s1 + $0x8] sm:$0xff] (!%p189_p2)   ;;  %v1220_v2 = vld [vmem:[%s1580_s1 + $0x10] sm:$0xff] (!%p189_p2)  }
   0x6   : > { %192 = sbr.rel (%p189_p2) target bundleno = 536 (0x218), region = 40  ;;  %p217_p3 = scmp.lt.s32.totalorder (!%p189_p2), %s1026_s22, 63  ;;  %1114 = vmatprep.subr.bf16.mxu0 (!%p189_p2), %v1218_v0  ;;  %v1221_v3 = vld [vmem:[%s1580_s1 + $0x18] sm:$0xff] (!%p189_p2)   ;;  %v1222_v5 = vld [vmem:[%s1580_s1 + $0x20] sm:$0xff] (!%p189_p2)   ;;  %v1243_v7 = vld [vmem:[%s1582_s3 + $0x8] sm:$0xff] (!%p189_p2)  }
   0x7   : > { %1115 = vmatpush3.bf16.msra.mxu0 (!%p189_p2), %v1218_v0  ;;  %v1242_v6 = vld [vmem:[%s1582_s3] sm:$0xff] (!%p189_p2)   ;;  %v1223_v8 = vld [vmem:[%s1580_s1 + $0x28] sm:$0xff] (!%p189_p2)   ;;  %v1244_v9 = vld [vmem:[%s1582_s3 + $0x10] sm:$0xff] (!%p189_p2)  }
   0x8   : > { %1116 = vmatprep.subr.bf16.mxu0 (!%p189_p2), %v1219_v1  ;;  %1162 = vmatprep.subr.bf16.mxu1 (!%p189_p2), %v1242_v6  ;;  %v1224_v10 = vld [vmem:[%s1580_s1 + $0x30] sm:$0xff] (!%p189_p2)   ;;  %v1245_v11 = vld [vmem:[%s1582_s3 + $0x18] sm:$0xff] (!%p189_p2)   ;;  %v1246_v13 = vld [vmem:[%s1582_s3 + $0x20] sm:$0xff] (!%p189_p2)  }
   0x9   : > { %1163 = vmatpush3.bf16.msra.mxu1 (!%p189_p2), %v1242_v6  ;;  %v1225_v12 = vld [vmem:[%s1580_s1 + $0x38] sm:$0xff] (!%p189_p2)   ;;  %v1247_v16 = vld [vmem:[%s1582_s3 + $0x28] sm:$0xff] (!%p189_p2)   ;;  %v1248_v30 = vld [vmem:[%s1582_s3 + $0x30] sm:$0xff] (!%p189_p2)  }
   0xa   : > { %1164 = vmatprep.subr.bf16.mxu1 (!%p189_p2), %v1243_v7  ;;  %v1249_v31 = vld [vmem:[%s1582_s3 + $0x38] sm:$0xff] (!%p189_p2)   ;;  %v1435_v32 = vld [vmem:[%s1581_s2] ss:$0 sm:$0xff] (!%p189_p2) }
   0xb   : > { %1117 = vmatpush3.bf16.msra.mxu0 (!%p189_p2), %v1219_v1 }
   0xc   : > { %1118 = vmatprep.subr.bf16.mxu0 (!%p189_p2), %v1220_v2 }
   0xd   : > { %s1586_s22 = smov (!%p217_p3, %s1026_s22), 63  ;;  %1165 = vmatpush3.bf16.msra.mxu1 %v1243_v7 }
   0xe   : > { %s1027_s27 = sshll.u32 %s1586_s22, 2  ;;  %1166 = vmatprep.subr.bf16.mxu1 %v1244_v9  ;;  %s1029_s13 = sshll.u32 %s1586_s22, 3 }
   0xf   : > { %s1327_s30 = scalar_lea.vmem %s1579_s0, %s1027_s27  ;;  %1119 = vmatpush3.bf16.msra.mxu0 %v1220_v2  ;;  %s1483_s16 = scalar_lea.vmem %s1584_s5, %s1029_s13 }
  0x10   : > { %v1333_v4 = vld [vmem:[%s1327_s30] sm:$0xff]   ;;  %1120 = vmatprep.subr.bf16.mxu0 %v1221_v3  ;;  %v1364_v14 = vld [vmem:[%s1327_s30 + $0x8] sm:$0xff]   ;;  %v1367_v15 = vld [vmem:[%s1327_s30 + $0x10] sm:$0xff]  }
  0x11   : > { %1130 = vmatprep.mubr.bf16.mxu0 %v1333_v4  ;;  %1167 = vmatpush3.bf16.msra.mxu1 %v1244_v9  ;;  %v1375_v17 = vld [vmem:[%s1327_s30 + $0x18] sm:$0xff]   ;;  %v1378_v18 = vld [vmem:[%s1327_s30 + $0x20] sm:$0xff]   ;;  %v1383_v19 = vld [vmem:[%s1327_s30 + $0x28] sm:$0xff]  }
  0x12   : > { %1168 = vmatprep.subr.bf16.mxu1 %v1245_v11  ;;  %v1386_v20 = vld [vmem:[%s1327_s30 + $0x30] sm:$0xff]   ;;  %v1391_v21 = vld [vmem:[%s1327_s30 + $0x38] sm:$0xff]   ;;  %v1394_v22 = vld [vmem:[%s1327_s30 + $0x40] sm:$0xff]  }
  0x13   : > { %1121 = vmatpush3.bf16.msra.mxu0 %v1221_v3  ;;  %v1399_v23 = vld [vmem:[%s1327_s30 + $0x48] sm:$0xff]   ;;  %v1402_v24 = vld [vmem:[%s1327_s30 + $0x50] sm:$0xff]   ;;  %v1407_v25 = vld [vmem:[%s1327_s30 + $0x58] sm:$0xff]  }
  0x14   : > { %1122 = vmatprep.subr.bf16.mxu0 %v1222_v5  ;;  %v1410_v26 = vld [vmem:[%s1327_s30 + $0x60] sm:$0xff]   ;;  %v1415_v27 = vld [vmem:[%s1327_s30 + $0x68] sm:$0xff]   ;;  %v1418_v28 = vld [vmem:[%s1327_s30 + $0x70] sm:$0xff]  }
  0x15   : > { %1169 = vmatpush3.bf16.msra.mxu1 %v1245_v11  ;;  %v1423_v29 = vld [vmem:[%s1327_s30 + $0x78] sm:$0xff]  }
  0x16   : > { %1170 = vmatprep.subr.bf16.mxu1 %v1246_v13 }
  0x17   : > { %1123 = vmatpush3.bf16.msra.mxu0 %v1222_v5 }
  0x18   : > { %1124 = vmatprep.subr.bf16.mxu0 %v1223_v8 }
  0x19   : > { %1171 = vmatpush3.bf16.msra.mxu1 %v1246_v13 }
  0x1a   : > { %1172 = vmatprep.subr.bf16.mxu1 %v1247_v16 }
  0x1b   : > { %1125 = vmatpush3.bf16.msra.mxu0 %v1223_v8 }
  0x1c   : > { %1126 = vmatprep.subr.bf16.mxu0 %v1224_v10 }
  0x1d   : > { %1173 = vmatpush3.bf16.msra.mxu1 %v1247_v16 }
  0x1e   : > { %1174 = vmatprep.subr.bf16.mxu1 %v1248_v30 }
  0x1f   : > { %1127 = vmatpush3.bf16.msra.mxu0 %v1224_v10 }
  0x20   : > { %1128 = vmatprep.subr.bf16.mxu0 %v1225_v12 }
  0x21   : > { %1175 = vmatpush3.bf16.msra.mxu1 %v1248_v30 }
  0x22   : > { %1176 = vmatprep.subr.bf16.mxu1 %v1249_v31 }
  0x23   : > { %1129 = vmatpush3.bf16.msra.mxu0 %v1225_v12 }
  0x25   : > { %1177 = vmatpush3.bf16.msra.mxu1 %v1249_v31 }
  0x26   : > { %1131 = vmatmul.mubr.bf16.vlgmr.msra.gmra.mrb[0].mxu0 %v1364_v14 }
  0x27   : > { %1134 = vmatprep.mubr.bf16.mxu0 %v1367_v15 }
  0x2e   : > { %1135 = vmatmul.mubr.bf16.gmra.mrb[4].mxu0 %v1375_v17 }
  0x2f   : > { %1138 = vmatprep.mubr.bf16.mxu0 %v1378_v18 }
  0x36   : > { %1139 = vmatmul.mubr.bf16.gmra.mrb[8].mxu0 %v1383_v19 }
  0x37   : > { %1142 = vmatprep.mubr.bf16.mxu0 %v1386_v20 }
  0x3e   : > { %1143 = vmatmul.mubr.bf16.gmra.mrb[12].mxu0 %v1391_v21 }
  0x3f   : > { %1146 = vmatprep.mubr.bf16.mxu0 %v1394_v22 }
  0x46   : > { %1147 = vmatmul.mubr.bf16.gmra.mrb[16].mxu0 %v1399_v23 }
  0x47   : > { %1150 = vmatprep.mubr.bf16.mxu0 %v1402_v24 }
  0x4e   : > { %1151 = vmatmul.mubr.bf16.gmra.mrb[20].mxu0 %v1407_v25 }
  0x4f   : > { %1154 = vmatprep.mubr.bf16.mxu0 %v1410_v26 }
  0x56   : > { %1155 = vmatmul.mubr.bf16.gmra.mrb[24].mxu0 %v1415_v27 }
  0x57   : > { %1158 = vmatprep.mubr.bf16.mxu0 %v1418_v28 }
  0x5e   : > { %1159 = vmatmul.mubr.bf16.gmra.mrb[28].mxu0 %v1423_v29 }
  0xf9   : > { %v1132_v33 = vpop.f32.mrb[0].mxu0 }
  0xfa   : > { %v471_v34 = vadd.f32 %v1132_v33, %v1435_v32  ;;  %v462_v35 = vpop.f32.mrb[1].mxu0 }
  0xfb   : > { %v463_v36 = vadd.f32 %v1435_v32, %v462_v35  ;;  %v1133_v37 = vpop.f32.mrb[2].mxu0 }
  0xfc   : > { %v474_v38 = vadd.f32 %v1133_v37, %v1435_v32  ;;  %v465_v39 = vpop.f32.mrb[3].mxu0  ;;  %v591_v41 = vmax.f32 %v471_v34, 0.0 }
  0xfd   : > { %v466_v40 = vadd.f32 %v1435_v32, %v465_v39  ;;  %v589_v43 = vmax.f32 %v463_v36, 0.0 }
  0xfe   : > { %v592_v42 = vmax.f32 %v474_v38, 0.0 }
  0xff   : > { %v590_v44 = vmax.f32 %v466_v40, 0.0 }
 0x100   : > { %v622_v45 = vpack.c.bf16 %v592_v42, %v591_v41 }
 0x101   : > { %v1136_v46 = vpop.f32.mrb[4].mxu0  ;;  %v621_v47 = vpack.c.bf16 %v590_v44, %v589_v43 }
 0x102   : > { %v487_v48 = vadd.f32 %v1136_v46, %v1435_v32  ;;  %v478_v49 = vpop.f32.mrb[5].mxu0 }
 0x103   : > { %v479_v50 = vadd.f32 %v1435_v32, %v478_v49  ;;  %v1137_v51 = vpop.f32.mrb[6].mxu0  ;;  %1178 = vmatprep.mubr.bf16.mxu1 %v621_v47 }
 0x104   : > { %v490_v52 = vadd.f32 %v1137_v51, %v1435_v32  ;;  %v481_v53 = vpop.f32.mrb[7].mxu0  ;;  %1179 = vmatmul.mubr.bf16.vlgmr.msra.gmra.mrb[0].mxu1 %v622_v45  ;;  %v595_v55 = vmax.f32 %v487_v48, 0.0 }
 0x105   : > { %v482_v54 = vadd.f32 %v1435_v32, %v481_v53  ;;  %v593_v57 = vmax.f32 %v479_v50, 0.0 }
 0x106   : > { %v596_v56 = vmax.f32 %v490_v52, 0.0 }
 0x107   : > { %v594_v58 = vmax.f32 %v482_v54, 0.0 }
 0x108   : > { %v624_v59 = vpack.c.bf16 %v596_v56, %v595_v55 }
 0x109   : > { %v623_v60 = vpack.c.bf16 %v594_v58, %v593_v57  ;;  %v1140_v61 = vpop.f32.mrb[8].mxu0 }
 0x10a   : > { %v503_v62 = vadd.f32 %v1140_v61, %v1435_v32  ;;  %v494_v63 = vpop.f32.mrb[9].mxu0 }
 0x10b   : > { %v495_v0 = vadd.f32 %v1435_v32, %v494_v63  ;;  %v1141_v1 = vpop.f32.mrb[10].mxu0  ;;  %1182 = vmatprep.mubr.bf16.mxu1 %v623_v60 }
 0x10c   : > { %v506_v2 = vadd.f32 %v1141_v1, %v1435_v32  ;;  %v497_v3 = vpop.f32.mrb[11].mxu0  ;;  %1183 = vmatmul.mubr.bf16.gmra.mrb[4].mxu1 %v624_v59  ;;  %v599_v6 = vmax.f32 %v503_v62, 0.0 }
 0x10d   : > { %v498_v5 = vadd.f32 %v1435_v32, %v497_v3  ;;  %v597_v8 = vmax.f32 %v495_v0, 0.0 }
 0x10e   : > { %v600_v7 = vmax.f32 %v506_v2, 0.0 }
 0x10f   : > { %v598_v9 = vmax.f32 %v498_v5, 0.0 }
 0x110   : > { %v626_v10 = vpack.c.bf16 %v600_v7, %v599_v6 }
 0x111   : > { %v625_v11 = vpack.c.bf16 %v598_v9, %v597_v8  ;;  %v1144_v12 = vpop.f32.mrb[12].mxu0 }
 0x112   : > { %v519_v13 = vadd.f32 %v1144_v12, %v1435_v32  ;;  %v510_v16 = vpop.f32.mrb[13].mxu0 }
 0x113   : > { %v511_v30 = vadd.f32 %v1435_v32, %v510_v16  ;;  %v1145_v31 = vpop.f32.mrb[14].mxu0  ;;  %1186 = vmatprep.mubr.bf16.mxu1 %v625_v11 }
 0x114   : > { %v522_v33 = vadd.f32 %v1145_v31, %v1435_v32  ;;  %v513_v34 = vpop.f32.mrb[15].mxu0  ;;  %1187 = vmatmul.mubr.bf16.gmra.mrb[8].mxu1 %v626_v10  ;;  %v603_v36 = vmax.f32 %v519_v13, 0.0 }
 0x115   : > { %v514_v35 = vadd.f32 %v1435_v32, %v513_v34  ;;  %v601_v38 = vmax.f32 %v511_v30, 0.0 }
 0x116   : > { %v604_v37 = vmax.f32 %v522_v33, 0.0 }
 0x117   : > { %v602_v39 = vmax.f32 %v514_v35, 0.0 }
 0x118   : > { %v628_v40 = vpack.c.bf16 %v604_v37, %v603_v36 }
 0x119   : > { %v627_v41 = vpack.c.bf16 %v602_v39, %v601_v38  ;;  %v1148_v42 = vpop.f32.mrb[16].mxu0 }
 0x11a   : > { %v535_v43 = vadd.f32 %v1148_v42, %v1435_v32  ;;  %v526_v44 = vpop.f32.mrb[17].mxu0 }
 0x11b   : > { %v527_v45 = vadd.f32 %v1435_v32, %v526_v44  ;;  %v1149_v46 = vpop.f32.mrb[18].mxu0  ;;  %1190 = vmatprep.mubr.bf16.mxu1 %v627_v41 }
 0x11c   : > { %v538_v47 = vadd.f32 %v1149_v46, %v1435_v32  ;;  %v529_v48 = vpop.f32.mrb[19].mxu0  ;;  %1191 = vmatmul.mubr.bf16.gmra.mrb[12].mxu1 %v628_v40  ;;  %v607_v50 = vmax.f32 %v535_v43, 0.0 }
 0x11d   : > { %v530_v49 = vadd.f32 %v1435_v32, %v529_v48  ;;  %v605_v52 = vmax.f32 %v527_v45, 0.0 }
 0x11e   : > { %v608_v51 = vmax.f32 %v538_v47, 0.0 }
 0x11f   : > { %v606_v53 = vmax.f32 %v530_v49, 0.0 }
 0x120   : > { %v630_v54 = vpack.c.bf16 %v608_v51, %v607_v50  ;;  %v1472_v51 = vld [vmem:[%s1583_s4] ss:$0 sm:$0xff] }
 0x121   : > { %v629_v55 = vpack.c.bf16 %v606_v53, %v605_v52  ;;  %v1152_v56 = vpop.f32.mrb[20].mxu0  ;;  %v871_v52 = vunpack.c.l.bf16 %v1364_v14  ;;  %v869_v53 = vunpack.c.l.bf16 %v1333_v4 }
 0x122   : > { %v551_v57 = vadd.f32 %v1152_v56, %v1435_v32  ;;  %v542_v58 = vpop.f32.mrb[21].mxu0  ;;  %v872_v56 = vunpack.c.h.bf16 %v1364_v14 }
 0x123   : > { %v543_v59 = vadd.f32 %v1435_v32, %v542_v58  ;;  %v1153_v60 = vpop.f32.mrb[22].mxu0  ;;  %1194 = vmatprep.mubr.bf16.mxu1 %v629_v55 }
 0x124   : > { %v554_v61 = vadd.f32 %v1153_v60, %v1435_v32  ;;  %v545_v62 = vpop.f32.mrb[23].mxu0  ;;  %1195 = vmatmul.mubr.bf16.gmra.mrb[16].mxu1 %v630_v54  ;;  %v611_v0 = vmax.f32 %v551_v57, 0.0  ;;  %v870_v57 = vunpack.c.h.bf16 %v1333_v4 }
 0x125   : > { %v546_v63 = vadd.f32 %v1435_v32, %v545_v62  ;;  %v609_v2 = vmax.f32 %v543_v59, 0.0 }
 0x126   : > { %v612_v1 = vmax.f32 %v554_v61, 0.0 }
 0x127   : > { %v610_v3 = vmax.f32 %v546_v63, 0.0 }
 0x128   : > { %v632_v5 = vpack.c.bf16 %v612_v1, %v611_v0  ;;  %v875_v1 = vunpack.c.l.bf16 %v1375_v17 }
 0x129   : > { %v631_v6 = vpack.c.bf16 %v610_v3, %v609_v2  ;;  %v1156_v7 = vpop.f32.mrb[24].mxu0  ;;  %v873_v3 = vunpack.c.l.bf16 %v1367_v15 }
 0x12a   : > { %v567_v8 = vadd.f32 %v1156_v7, %v1435_v32  ;;  %v558_v9 = vpop.f32.mrb[25].mxu0  ;;  %v876_v7 = vunpack.c.h.bf16 %v1375_v17  ;;  %v879_v17 = vunpack.c.l.bf16 %v1383_v19 }
 0x12b   : > { %v559_v10 = vadd.f32 %v1435_v32, %v558_v9  ;;  %v1157_v11 = vpop.f32.mrb[26].mxu0  ;;  %1198 = vmatprep.mubr.bf16.mxu1 %v631_v6 }
 0x12c   : > { %v570_v12 = vadd.f32 %v1157_v11, %v1435_v32  ;;  %v561_v13 = vpop.f32.mrb[27].mxu0  ;;  %1199 = vmatmul.mubr.bf16.gmra.mrb[20].mxu1 %v632_v5  ;;  %v615_v30 = vmax.f32 %v567_v8, 0.0 }
 0x12d   : > { %v562_v16 = vadd.f32 %v1435_v32, %v561_v13  ;;  %v613_v33 = vmax.f32 %v559_v10, 0.0  ;;  %v874_v10 = vunpack.c.h.bf16 %v1367_v15  ;;  %v877_v15 = vunpack.c.l.bf16 %v1378_v18 }
 0x12e   : > { %v616_v31 = vmax.f32 %v570_v12, 0.0 }
 0x12f   : > { %v614_v34 = vmax.f32 %v562_v16, 0.0 }
 0x130   : > { %v634_v35 = vpack.c.bf16 %v616_v31, %v615_v30 }
 0x131   : > { %v633_v36 = vpack.c.bf16 %v614_v34, %v613_v33  ;;  %v1160_v37 = vpop.f32.mrb[28].mxu0 }
 0x132   : > { %v583_v38 = vadd.f32 %v1160_v37, %v1435_v32  ;;  %v574_v39 = vpop.f32.mrb[29].mxu0  ;;  %v880_v37 = vunpack.c.h.bf16 %v1383_v19  ;;  %v883_v19 = vunpack.c.l.bf16 %v1391_v21 }
 0x133   : > { %v575_v40 = vadd.f32 %v1435_v32, %v574_v39  ;;  %v1161_v41 = vpop.f32.mrb[30].mxu0  ;;  %1202 = vmatprep.mubr.bf16.mxu1 %v633_v36 }
 0x134   : > { %v586_v42 = vadd.f32 %v1161_v41, %v1435_v32  ;;  %v577_v43 = vpop.f32.mrb[31].mxu0  ;;  %1203 = vmatmul.mubr.bf16.gmra.mrb[24].mxu1 %v634_v35  ;;  %v619_v45 = vmax.f32 %v583_v38, 0.0 }
 0x135   : > { %v578_v44 = vadd.f32 %v1435_v32, %v577_v43  ;;  %v617_v47 = vmax.f32 %v575_v40, 0.0  ;;  %v878_v40 = vunpack.c.h.bf16 %v1378_v18  ;;  %v881_v18 = vunpack.c.l.bf16 %v1386_v20 }
 0x136   : > { %v620_v46 = vmax.f32 %v586_v42, 0.0 }
 0x137   : > { %v618_v48 = vmax.f32 %v578_v44, 0.0 }
 0x138   : > { %v636_v49 = vpack.c.bf16 %v620_v46, %v619_v45 }
 0x139   : > { %v635_v50 = vpack.c.bf16 %v618_v48, %v617_v47 }
 0x13b   : > { %1206 = vmatprep.mubr.bf16.mxu1 %v635_v50 }
 0x13c   : > { %1207 = vmatmul.mubr.bf16.gmra.mrb[28].mxu1 %v636_v49 }
 0x1d7   : > { %v1180_v54 = vpop.f32.mrb[0].mxu1 }
 0x1d8   : > { %v751_v32 = vadd.f32 %v1180_v54, %v1472_v51  ;;  %v742_v55 = vpop.f32.mrb[1].mxu1 }
 0x1d9   : > { %v743_v58 = vadd.f32 %v1472_v51, %v742_v55  ;;  %v1181_v59 = vpop.f32.mrb[2].mxu1 }
 0x1da   : > { %v903_v60 = vadd.f32 %v871_v52, %v751_v32  ;;  %v754_v61 = vadd.f32 %v1181_v59, %v1472_v51  ;;  %v745_v62 = vpop.f32.mrb[3].mxu1  ;;  %v884_v52 = vunpack.c.h.bf16 %v1391_v21  ;;  %v882_v32 = vunpack.c.h.bf16 %v1386_v20 }
 0x1db   : > { %v901_v63 = vadd.f32 %v869_v53, %v743_v58  ;;  %v746_v14 = vadd.f32 %v1472_v51, %v745_v62  ;;  %v887_v21 = vunpack.c.l.bf16 %v1399_v23  ;;  %v885_v20 = vunpack.c.l.bf16 %v1394_v22 }
 0x1dc   : > { %935 = vst [vmem:[%s1483_s16 + $0x10] sm:$0xff] %v903_v60  ;;  %v904_v4 = vadd.f32 %v872_v56, %v754_v61 }
 0x1dd   : > { %933 = vst [vmem:[%s1483_s16] sm:$0xff] %v901_v63  ;;  %v902_v0 = vadd.f32 %v870_v57, %v746_v14 }
 0x1de   : > { %936 = vst [vmem:[%s1483_s16 + $0x18] sm:$0xff] %v904_v4  ;;  %v888_v4 = vunpack.c.h.bf16 %v1399_v23  ;;  %v891_v23 = vunpack.c.l.bf16 %v1407_v25 }
 0x1df   : > { %934 = vst [vmem:[%s1483_s16 + $0x8] sm:$0xff] %v902_v0  ;;  %v1184_v2 = vpop.f32.mrb[4].mxu1 }
 0x1e0   : > { %v767_v5 = vadd.f32 %v1184_v2, %v1472_v51  ;;  %v758_v6 = vpop.f32.mrb[5].mxu1  ;;  %v886_v2 = vunpack.c.h.bf16 %v1394_v22  ;;  %v889_v22 = vunpack.c.l.bf16 %v1402_v24 }
 0x1e1   : > { %v759_v8 = vadd.f32 %v1472_v51, %v758_v6  ;;  %v1185_v9 = vpop.f32.mrb[6].mxu1 }
 0x1e2   : > { %v907_v11 = vadd.f32 %v875_v1, %v767_v5  ;;  %v770_v12 = vadd.f32 %v1185_v9, %v1472_v51  ;;  %v761_v13 = vpop.f32.mrb[7].mxu1 }
 0x1e3   : > { %v905_v16 = vadd.f32 %v873_v3, %v759_v8  ;;  %v762_v30 = vadd.f32 %v1472_v51, %v761_v13 }
 0x1e4   : > { %939 = vst [vmem:[%s1483_s16 + $0x30] sm:$0xff] %v907_v11  ;;  %v908_v31 = vadd.f32 %v876_v7, %v770_v12 }
 0x1e5   : > { %937 = vst [vmem:[%s1483_s16 + $0x20] sm:$0xff] %v905_v16  ;;  %v906_v33 = vadd.f32 %v874_v10, %v762_v30  ;;  %v892_v16 = vunpack.c.h.bf16 %v1407_v25  ;;  %v895_v25 = vunpack.c.l.bf16 %v1415_v27 }
 0x1e6   : > { %940 = vst [vmem:[%s1483_s16 + $0x38] sm:$0xff] %v908_v31 }
 0x1e7   : > { %938 = vst [vmem:[%s1483_s16 + $0x28] sm:$0xff] %v906_v33  ;;  %v1188_v34 = vpop.f32.mrb[8].mxu1  ;;  %v890_v33 = vunpack.c.h.bf16 %v1402_v24  ;;  %v893_v24 = vunpack.c.l.bf16 %v1410_v26 }
 0x1e8   : > { %v783_v35 = vadd.f32 %v1188_v34, %v1472_v51  ;;  %v774_v36 = vpop.f32.mrb[9].mxu1 }
 0x1e9   : > { %v775_v38 = vadd.f32 %v1472_v51, %v774_v36  ;;  %v1189_v39 = vpop.f32.mrb[10].mxu1 }
 0x1ea   : > { %v911_v41 = vadd.f32 %v879_v17, %v783_v35  ;;  %v786_v42 = vadd.f32 %v1189_v39, %v1472_v51  ;;  %v777_v43 = vpop.f32.mrb[11].mxu1 }
 0x1eb   : > { %v909_v44 = vadd.f32 %v877_v15, %v775_v38  ;;  %v778_v45 = vadd.f32 %v1472_v51, %v777_v43 }
 0x1ec   : > { %943 = vst [vmem:[%s1483_s16 + $0x50] sm:$0xff] %v911_v41  ;;  %v912_v46 = vadd.f32 %v880_v37, %v786_v42  ;;  %v896_v42 = vunpack.c.h.bf16 %v1415_v27  ;;  %v899_v27 = vunpack.c.l.bf16 %v1423_v29 }
 0x1ed   : > { %941 = vst [vmem:[%s1483_s16 + $0x40] sm:$0xff] %v909_v44  ;;  %v910_v47 = vadd.f32 %v878_v40, %v778_v45  ;;  %v894_v45 = vunpack.c.h.bf16 %v1410_v26  ;;  %v897_v26 = vunpack.c.l.bf16 %v1418_v28 }
 0x1ee   : > { %944 = vst [vmem:[%s1483_s16 + $0x58] sm:$0xff] %v912_v46 }
 0x1ef   : > { %942 = vst [vmem:[%s1483_s16 + $0x48] sm:$0xff] %v910_v47  ;;  %v1192_v48 = vpop.f32.mrb[12].mxu1 }
 0x1f0   : > { %v799_v49 = vadd.f32 %v1192_v48, %v1472_v51  ;;  %v790_v50 = vpop.f32.mrb[13].mxu1 }
 0x1f1   : > { %v791_v53 = vadd.f32 %v1472_v51, %v790_v50  ;;  %v1193_v54 = vpop.f32.mrb[14].mxu1 }
 0x1f2   : > { %v915_v55 = vadd.f32 %v883_v19, %v799_v49  ;;  %v802_v56 = vadd.f32 %v1193_v54, %v1472_v51  ;;  %v793_v57 = vpop.f32.mrb[15].mxu1 }
 0x1f3   : > { %v913_v58 = vadd.f32 %v881_v18, %v791_v53  ;;  %v794_v59 = vadd.f32 %v1472_v51, %v793_v57  ;;  %v898_v57 = vunpack.c.h.bf16 %v1418_v28 }
 0x1f4   : > { %947 = vst [vmem:[%s1483_s16 + $0x70] sm:$0xff] %v915_v55  ;;  %v916_v60 = vadd.f32 %v884_v52, %v802_v56 }
 0x1f5   : > { %945 = vst [vmem:[%s1483_s16 + $0x60] sm:$0xff] %v913_v58  ;;  %v914_v61 = vadd.f32 %v882_v32, %v794_v59  ;;  %v900_v32 = vunpack.c.h.bf16 %v1423_v29 }
 0x1f6   : > { %948 = vst [vmem:[%s1483_s16 + $0x78] sm:$0xff] %v916_v60 }
 0x1f7   : > { %946 = vst [vmem:[%s1483_s16 + $0x68] sm:$0xff] %v914_v61  ;;  %v1196_v62 = vpop.f32.mrb[16].mxu1 }
 0x1f8   : > { %v815_v63 = vadd.f32 %v1196_v62, %v1472_v51  ;;  %v806_v14 = vpop.f32.mrb[17].mxu1 }
 0x1f9   : > { %v807_v0 = vadd.f32 %v1472_v51, %v806_v14  ;;  %v1197_v1 = vpop.f32.mrb[18].mxu1 }
 0x1fa   : > { %v919_v3 = vadd.f32 %v887_v21, %v815_v63  ;;  %v818_v5 = vadd.f32 %v1197_v1, %v1472_v51  ;;  %v809_v6 = vpop.f32.mrb[19].mxu1 }
 0x1fb   : > { %v917_v7 = vadd.f32 %v885_v20, %v807_v0  ;;  %v810_v8 = vadd.f32 %v1472_v51, %v809_v6 }
 0x1fc   : > { %951 = vst [vmem:[%s1483_s16 + $0x90] sm:$0xff] %v919_v3  ;;  %v920_v9 = vadd.f32 %v888_v4, %v818_v5 }
 0x1fd   : > { %949 = vst [vmem:[%s1483_s16 + $0x80] sm:$0xff] %v917_v7  ;;  %v918_v10 = vadd.f32 %v886_v2, %v810_v8 }
 0x1fe   : > { %952 = vst [vmem:[%s1483_s16 + $0x98] sm:$0xff] %v920_v9 }
 0x1ff   : > { %950 = vst [vmem:[%s1483_s16 + $0x88] sm:$0xff] %v918_v10  ;;  %v1200_v11 = vpop.f32.mrb[20].mxu1 }
 0x200   : > { %v831_v12 = vadd.f32 %v1200_v11, %v1472_v51  ;;  %v822_v13 = vpop.f32.mrb[21].mxu1 }
 0x201   : > { %v823_v30 = vadd.f32 %v1472_v51, %v822_v13  ;;  %v1201_v31 = vpop.f32.mrb[22].mxu1 }
 0x202   : > { %v923_v17 = vadd.f32 %v891_v23, %v831_v12  ;;  %v834_v34 = vadd.f32 %v1201_v31, %v1472_v51  ;;  %v825_v15 = vpop.f32.mrb[23].mxu1 }
 0x203   : > { %v921_v35 = vadd.f32 %v889_v22, %v823_v30  ;;  %v826_v36 = vadd.f32 %v1472_v51, %v825_v15 }
 0x204   : > { %955 = vst [vmem:[%s1483_s16 + $0xb0] sm:$0xff] %v923_v17  ;;  %v924_v37 = vadd.f32 %v892_v16, %v834_v34 }
 0x205   : > { %953 = vst [vmem:[%s1483_s16 + $0xa0] sm:$0xff] %v921_v35  ;;  %v922_v38 = vadd.f32 %v890_v33, %v826_v36 }
 0x206   : > { %956 = vst [vmem:[%s1483_s16 + $0xb8] sm:$0xff] %v924_v37 }
 0x207   : > { %954 = vst [vmem:[%s1483_s16 + $0xa8] sm:$0xff] %v922_v38  ;;  %v1204_v39 = vpop.f32.mrb[24].mxu1 }
 0x208   : > { %v847_v40 = vadd.f32 %v1204_v39, %v1472_v51  ;;  %v838_v41 = vpop.f32.mrb[25].mxu1 }
 0x209   : > { %v839_v43 = vadd.f32 %v1472_v51, %v838_v41  ;;  %v1205_v44 = vpop.f32.mrb[26].mxu1 }
 0x20a   : > { %v927_v46 = vadd.f32 %v895_v25, %v847_v40  ;;  %v850_v47 = vadd.f32 %v1205_v44, %v1472_v51  ;;  %v841_v19 = vpop.f32.mrb[27].mxu1 }
 0x20b   : > { %v925_v48 = vadd.f32 %v893_v24, %v839_v43  ;;  %v842_v18 = vadd.f32 %v1472_v51, %v841_v19 }
 0x20c   : > { %959 = vst [vmem:[%s1483_s16 + $0xd0] sm:$0xff] %v927_v46  ;;  %v928_v49 = vadd.f32 %v896_v42, %v850_v47 }
 0x20d   : > { %957 = vst [vmem:[%s1483_s16 + $0xc0] sm:$0xff] %v925_v48  ;;  %v926_v50 = vadd.f32 %v894_v45, %v842_v18 }
 0x20e   : > { %960 = vst [vmem:[%s1483_s16 + $0xd8] sm:$0xff] %v928_v49 }
 0x20f   : > { %958 = vst [vmem:[%s1483_s16 + $0xc8] sm:$0xff] %v926_v50  ;;  %v1208_v52 = vpop.f32.mrb[28].mxu1 }
 0x210   : > { %v863_v53 = vadd.f32 %v1208_v52, %v1472_v51  ;;  %v854_v54 = vpop.f32.mrb[29].mxu1 }
 0x211   : > { %v855_v55 = vadd.f32 %v1472_v51, %v854_v54  ;;  %v1209_v56 = vpop.f32.mrb[30].mxu1 }
 0x212   : > { %v931_v58 = vadd.f32 %v899_v27, %v863_v53  ;;  %v866_v59 = vadd.f32 %v1209_v56, %v1472_v51  ;;  %v857_v60 = vpop.f32.mrb[31].mxu1 }
 0x213   : > { %v929_v61 = vadd.f32 %v897_v26, %v855_v55  ;;  %v858_v21 = vadd.f32 %v1472_v51, %v857_v60 }
 0x214   : > { %963 = vst [vmem:[%s1483_s16 + $0xf0] sm:$0xff] %v931_v58  ;;  %v932_v62 = vadd.f32 %v900_v32, %v866_v59 }
 0x215   : > { %961 = vst [vmem:[%s1483_s16 + $0xe0] sm:$0xff] %v929_v61  ;;  %v930_v20 = vadd.f32 %v898_v57, %v858_v21 }
 0x216   : > { %964 = vst [vmem:[%s1483_s16 + $0xf8] sm:$0xff] %v932_v62 }
 0x217   : > { %962 = vst [vmem:[%s1483_s16 + $0xe8] sm:$0xff] %v930_v20 }
 0x218 PF: > { %s15_s18 = sadd.s32 1, %s1272_s18  }
 0x219   : > { %p12_p4 = scmp.ge.s32.totalorder %s15_s18, 4  }
 0x21b   :  { %14 = sbr.rel (!%p12_p4) target bundleno = 1 (0x1), region = 70 }

</bundles_post_ra>
